<compile_context>
chip_gen: v5e
topology: v5e:2x2
jax: 0.10.0
libtpu: 0.0.40
codegen_flags: <defaults>
</compile_context>

<pallas_src>
import jax
import jax.numpy as jnp
from jax.experimental import pallas as pl
from jax.experimental.pallas import tpu as pltpu


def _dueling_dqn_kernel(x_ref, w1_ref, b1_ref, w2_ref, b2_ref,
                        wh_ref, bh_ref, out_ref):
    # fc1 + ReLU: bf16 x bf16 -> f32 accumulation on the MXU.
    h1 = jnp.dot(x_ref[...], w1_ref[...], preferred_element_type=jnp.float32)
    h1 = jnp.maximum(h1 + b1_ref[...], 0.0)

    # fc2 + ReLU.
    h2 = jnp.dot(h1.astype(w2_ref.dtype), w2_ref[...],
                 preferred_element_type=jnp.float32)
    h2 = jnp.maximum(h2 + b2_ref[...], 0.0)

    # Fused (V | A) head: one lane-dense (256, head_pad) matmul, single
    # unmasked store of the padded output block.
    out = jnp.dot(h2.astype(wh_ref.dtype), wh_ref[...],
                  preferred_element_type=jnp.float32)
    out_ref[...] = (out + bh_ref[...]).astype(out_ref.dtype)


def dueling_dqn_forward(state, params, *, block_b=256):
    """state: (B, input_dims) float32. Returns (V: (B,1), A: (B,n_actions))."""
    B, in_dims = state.shape
    n_actions = params["n_actions"]
    head_pad = params["wh"].shape[1]

    # Precision decision at the boundary: bf16 activations feed the MXU's
    # native bf16 path; all accumulation stays f32 inside the kernel.
    x = state.astype(jnp.bfloat16)

    # Batch tiling: small batches run as one grid point (full-array block);
    # large batches stream (block_b, in_dims) tiles while the weights stay
    # VMEM-resident (constant block index across grid iterations).
    if B > block_b:
        tb = block_b                      # 256 fills the v6e/v7x MXU rows
    else:
        tb = max(8, ((B + 7) // 8) * 8)   # sublane-friendly full-batch block
    b_pad = ((B + tb - 1) // tb) * tb
    if b_pad != B:
        x = jnp.pad(x, ((0, b_pad - B), (0, 0)))

    grid = (b_pad // tb,)

    def batch_map(i):
        return (i, 0)

    def const_map(i):
        return (0, 0)

    in_specs = [
        pl.BlockSpec((tb, in_dims), batch_map),
        pl.BlockSpec(params["w1"].shape, const_map),
        pl.BlockSpec(params["b1"].shape, const_map),
        pl.BlockSpec(params["w2"].shape, const_map),
        pl.BlockSpec(params["b2"].shape, const_map),
        pl.BlockSpec(params["wh"].shape, const_map),
        pl.BlockSpec(params["bh"].shape, const_map),
    ]
    out_specs = pl.BlockSpec((tb, head_pad), batch_map)

    out = pl.pallas_call(
        _dueling_dqn_kernel,
        out_shape=jax.ShapeDtypeStruct((b_pad, head_pad), jnp.float32),
        grid=grid,
        in_specs=in_specs,
        out_specs=out_specs,
        compiler_params=pltpu.CompilerParams(
            dimension_semantics=("parallel",)),
    )(x, params["w1"], params["b1"], params["w2"], params["b2"],
      params["wh"], params["bh"])

    V = out[:B, :1]
    A = out[:B, 1:1 + n_actions]
    return V, A


def init_params(key, input_dims, n_actions):
    """PyTorch-style uniform fan-in init. Weights stored (in, out) in bf16;
    V and A heads fused into one lane-padded (256, head_pad) weight."""
    ks = jax.random.split(key, 8)

    def lin(kw, kb, fan_in, fan_out):
        bound = 1.0 / (fan_in ** 0.5)
        w = jax.random.uniform(kw, (fan_in, fan_out), jnp.float32, -bound, bound)
        b = jax.random.uniform(kb, (1, fan_out), jnp.float32, -bound, bound)
        return w, b

    w1, b1 = lin(ks[0], ks[1], input_dims, 512)
    w2, b2 = lin(ks[2], ks[3], 512, 256)
    wv, bv = lin(ks[4], ks[5], 256, 1)
    wa, ba = lin(ks[6], ks[7], 256, n_actions)

    n_out = 1 + n_actions
    head_pad = max(128, ((n_out + 127) // 128) * 128)
    wh = jnp.zeros((256, head_pad), jnp.float32)
    wh = wh.at[:, :n_out].set(jnp.concatenate([wv, wa], axis=1))
    bh = jnp.zeros((1, head_pad), jnp.float32)
    bh = bh.at[:, :n_out].set(jnp.concatenate([bv, ba], axis=1))

    return {
        "w1": w1.astype(jnp.bfloat16), "b1": b1,
        "w2": w2.astype(jnp.bfloat16), "b2": b2,
        "wh": wh.astype(jnp.bfloat16), "bh": bh,
        "n_actions": n_actions,
    }


def _reference_forward(state, p):
    """Pure-JAX reference replicating the kernel's bf16-in / f32-accum math."""
    x = state.astype(jnp.bfloat16)
    h1 = jnp.maximum(
        jnp.dot(x, p["w1"], preferred_element_type=jnp.float32) + p["b1"], 0.0)
    h2 = jnp.maximum(
        jnp.dot(h1.astype(jnp.bfloat16), p["w2"],
                preferred_element_type=jnp.float32) + p["b2"], 0.0)
    out = jnp.dot(h2.astype(jnp.bfloat16), p["wh"],
                  preferred_element_type=jnp.float32) + p["bh"]
    n = p["n_actions"]
    return out[:, :1], out[:, 1:1 + n]


if __name__ == "__main__":
    key = jax.random.PRNGKey(0)
    k_params, k_state = jax.random.split(key)

    batch = 8
    input_dims = 32
    n_actions = 6

    params = init_params(k_params, input_dims, n_actions)
    state = jax.random.normal(k_state, (batch, input_dims), jnp.float32)

    V, A = dueling_dqn_forward(state, params)
    V, A = jax.block_until_ready((V, A))

    V_ref, A_ref = _reference_forward(state, params)
    assert V.shape == (batch, 1) and A.shape == (batch, n_actions)
    assert jnp.allclose(V, V_ref, atol=5e-3, rtol=5e-3)
    assert jnp.allclose(A, A_ref, atol=5e-3, rtol=5e-3)

    print("KERNEL_OK")
</pallas_src>

<mosaic_0001>
module attributes {stable_mosaic.version = 11 : i64} {
  func.func @_dueling_dqn_kernel(%arg0: i32, %arg1: memref<8x32xbf16, #tpu.memory_space<vmem>>, %arg2: memref<32x512xbf16, #tpu.memory_space<vmem>>, %arg3: memref<1x512xf32, #tpu.memory_space<vmem>>, %arg4: memref<512x256xbf16, #tpu.memory_space<vmem>>, %arg5: memref<1x256xf32, #tpu.memory_space<vmem>>, %arg6: memref<256x128xbf16, #tpu.memory_space<vmem>>, %arg7: memref<1x128xf32, #tpu.memory_space<vmem>>, %arg8: memref<8x128xf32, #tpu.memory_space<vmem>>) attributes {dimension_semantics = [#tpu.dimension_semantics<parallel>], iteration_bounds = array<i64: 1>, scalar_prefetch = 0 : i64, scratch_operands = 0 : i64, tpu.core_type = #tpu.core_type<tc>, window_params = [{transform_indices = @transform_0, window_bounds = array<i64: 8, 32>}, {pipeline_mode = #tpu.pipeline_mode<synchronous>, transform_indices = @transform_1, window_bounds = array<i64: 32, 512>}, {pipeline_mode = #tpu.pipeline_mode<synchronous>, transform_indices = @transform_2, window_bounds = array<i64: 1, 512>}, {pipeline_mode = #tpu.pipeline_mode<synchronous>, transform_indices = @transform_3, window_bounds = array<i64: 512, 256>}, {pipeline_mode = #tpu.pipeline_mode<synchronous>, transform_indices = @transform_4, window_bounds = array<i64: 1, 256>}, {pipeline_mode = #tpu.pipeline_mode<synchronous>, transform_indices = @transform_5, window_bounds = array<i64: 256, 128>}, {pipeline_mode = #tpu.pipeline_mode<synchronous>, transform_indices = @transform_6, window_bounds = array<i64: 1, 128>}, {transform_indices = @transform_7, window_bounds = array<i64: 8, 128>}]} {
    %c0 = arith.constant 0 : index
    %c0_0 = arith.constant 0 : index
    %0 = vector.load %arg1[%c0, %c0_0] : memref<8x32xbf16, #tpu.memory_space<vmem>>, vector<8x32xbf16>
    %c0_1 = arith.constant 0 : index
    %c0_2 = arith.constant 0 : index
    %1 = vector.load %arg2[%c0_1, %c0_2] : memref<32x512xbf16, #tpu.memory_space<vmem>>, vector<32x512xbf16>
    %cst = arith.constant dense<0.000000e+00> : vector<8x512xf32>
    %2 = tpu.matmul %0, %1, %cst {dimension_numbers = #tpu.dot_dimension_numbers<[1], [0], [0], [1], [0, 0, 1, 1], [], []>} : vector<8x32xbf16>, vector<32x512xbf16>, vector<8x512xf32> -> vector<8x512xf32>
    %c0_3 = arith.constant 0 : index
    %c0_4 = arith.constant 0 : index
    %3 = vector.load %arg3[%c0_3, %c0_4] : memref<1x512xf32, #tpu.memory_space<vmem>>, vector<1x512xf32>
    %4 = vector.broadcast %3 : vector<1x512xf32> to vector<8x512xf32>
    %5 = arith.addf %2, %4 : vector<8x512xf32>
    %cst_5 = arith.constant 0.000000e+00 : f32
    %6 = vector.broadcast %cst_5 : f32 to vector<8x512xf32>
    %7 = arith.maximumf %5, %6 : vector<8x512xf32>
    %8 = arith.truncf %7 : vector<8x512xf32> to vector<8x512xbf16>
    %c0_6 = arith.constant 0 : index
    %c0_7 = arith.constant 0 : index
    %9 = vector.load %arg4[%c0_6, %c0_7] : memref<512x256xbf16, #tpu.memory_space<vmem>>, vector<512x256xbf16>
    %cst_8 = arith.constant dense<0.000000e+00> : vector<8x256xf32>
    %10 = tpu.matmul %8, %9, %cst_8 {dimension_numbers = #tpu.dot_dimension_numbers<[1], [0], [0], [1], [0, 0, 1, 1], [], []>} : vector<8x512xbf16>, vector<512x256xbf16>, vector<8x256xf32> -> vector<8x256xf32>
    %c0_9 = arith.constant 0 : index
    %c0_10 = arith.constant 0 : index
    %11 = vector.load %arg5[%c0_9, %c0_10] : memref<1x256xf32, #tpu.memory_space<vmem>>, vector<1x256xf32>
    %12 = vector.broadcast %11 : vector<1x256xf32> to vector<8x256xf32>
    %13 = arith.addf %10, %12 : vector<8x256xf32>
    %cst_11 = arith.constant 0.000000e+00 : f32
    %14 = vector.broadcast %cst_11 : f32 to vector<8x256xf32>
    %15 = arith.maximumf %13, %14 : vector<8x256xf32>
    %16 = arith.truncf %15 : vector<8x256xf32> to vector<8x256xbf16>
    %c0_12 = arith.constant 0 : index
    %c0_13 = arith.constant 0 : index
    %17 = vector.load %arg6[%c0_12, %c0_13] : memref<256x128xbf16, #tpu.memory_space<vmem>>, vector<256x128xbf16>
    %cst_14 = arith.constant dense<0.000000e+00> : vector<8x128xf32>
    %18 = tpu.matmul %16, %17, %cst_14 {dimension_numbers = #tpu.dot_dimension_numbers<[1], [0], [0], [1], [0, 0, 1, 1], [], []>} : vector<8x256xbf16>, vector<256x128xbf16>, vector<8x128xf32> -> vector<8x128xf32>
    %c0_15 = arith.constant 0 : index
    %c0_16 = arith.constant 0 : index
    %19 = vector.load %arg7[%c0_15, %c0_16] : memref<1x128xf32, #tpu.memory_space<vmem>>, vector<1x128xf32>
    %20 = vector.broadcast %19 : vector<1x128xf32> to vector<8x128xf32>
    %21 = arith.addf %18, %20 : vector<8x128xf32>
    %c0_17 = arith.constant 0 : index
    %c0_18 = arith.constant 0 : index
    %22 = vector.load %arg8[%c0_17, %c0_18] : memref<8x128xf32, #tpu.memory_space<vmem>>, vector<8x128xf32>
    tpu.vector_store %arg8[%c0_17, %c0_18], %21 {strides = array<i32>} : memref<8x128xf32, #tpu.memory_space<vmem>>, vector<8x128xf32>,
    return
  }
  func.func @transform_0(%arg0: i32) -> (i32, i32) {
    %c0_i32 = arith.constant 0 : i32
    %c0_i32_0 = arith.constant 0 : i32
    return %arg0, %c0_i32 : i32, i32
  }
  func.func @transform_1(%arg0: i32) -> (i32, i32) {
    %c0_i32 = arith.constant 0 : i32
    %c0_i32_0 = arith.constant 0 : i32
    %c0_i32_1 = arith.constant 0 : i32
    return %c0_i32, %c0_i32_0 : i32, i32
  }
  func.func @transform_2(%arg0: i32) -> (i32, i32) {
    %c0_i32 = arith.constant 0 : i32
    %c0_i32_0 = arith.constant 0 : i32
    %c0_i32_1 = arith.constant 0 : i32
    return %c0_i32, %c0_i32_0 : i32, i32
  }
  func.func @transform_3(%arg0: i32) -> (i32, i32) {
    %c0_i32 = arith.constant 0 : i32
    %c0_i32_0 = arith.constant 0 : i32
    %c0_i32_1 = arith.constant 0 : i32
    return %c0_i32, %c0_i32_0 : i32, i32
  }
  func.func @transform_4(%arg0: i32) -> (i32, i32) {
    %c0_i32 = arith.constant 0 : i32
    %c0_i32_0 = arith.constant 0 : i32
    %c0_i32_1 = arith.constant 0 : i32
    return %c0_i32, %c0_i32_0 : i32, i32
  }
  func.func @transform_5(%arg0: i32) -> (i32, i32) {
    %c0_i32 = arith.constant 0 : i32
    %c0_i32_0 = arith.constant 0 : i32
    %c0_i32_1 = arith.constant 0 : i32
    return %c0_i32, %c0_i32_0 : i32, i32
  }
  func.func @transform_6(%arg0: i32) -> (i32, i32) {
    %c0_i32 = arith.constant 0 : i32
    %c0_i32_0 = arith.constant 0 : i32
    %c0_i32_1 = arith.constant 0 : i32
    return %c0_i32, %c0_i32_0 : i32, i32
  }
  func.func @transform_7(%arg0: i32) -> (i32, i32) {
    %c0_i32 = arith.constant 0 : i32
    %c0_i32_0 = arith.constant 0 : i32
    return %arg0, %c0_i32 : i32, i32
  }
}

</mosaic_0001>

<bundles_post_ra>
// kernel: tpu_custom_call.1
= control target key start
LH: loop header
LB: loop body
LE: loop exit
PB: predicated region body
PF: predicated region fallthrough
CT: control target
= control target key end

     0   :  { %12 = vsyncpa [#allocation3], 0  ;;  %s1596_s0 = inlined_call_operand.hbm [shape: bf16[8,32], index: 0, kind: input, shape index: {}]   ;;  %s1597_s1 = inlined_call_operand.hbm [shape: bf16[32,512], index: 1, kind: input, shape index: {}]   ;;  %s1598_s2 = inlined_call_operand.hbm [shape: f32[1,512], index: 2, kind: input, shape index: {}]   ;;  %s1599_s3 = inlined_call_operand.hbm [shape: bf16[512,256], index: 3, kind: input, shape index: {}]   ;;  %s1600_s4 = inlined_call_operand.vmem [shape: f32[1,256], index: 4, kind: input, shape index: {}]   ;;  %s1601_s5 = inlined_call_operand.hbm [shape: bf16[256,128], index: 5, kind: input, shape index: {}]   ;;  %s1602_s6 = inlined_call_operand.vmem [shape: f32[1,128], index: 6, kind: input, shape index: {}]   ;;  %s1603_s7 = inlined_call_operand.hbm [shape: f32[8,128], index: 7, kind: output, shape index: {}]  }
   0x1   :  { %13 = vsyncpa [#allocation6], 0 }
   0x2   :  { %14 = vsyncpa [#allocation9], 0  ;;  %s31_s26 = sshll.u32 %s1597_s1, 4  ;;  %s32_s26 = int_to_ptr.hbm [resolvable:$true] %s31_s26 }
   0x3   :  { %15 = vsyncpa [#allocation4], 0  ;;  %s1510_s27 = smov [#allocation5]   ;;  %s55_s8 = sshll.u32 %s1599_s3, 4  ;;  %s56_s8 = int_to_ptr.hbm [resolvable:$true] %s55_s8 }
   0x4   :  { %s33_s28 = sshll.u32 %s1510_s27, 4  ;;  %s1511_s9 = smov 256   ;;  %s34_s28 = int_to_ptr.vmem [resolvable:$true] %s33_s28 }
   0x5   :  { %s1512_s10 = smov 16   ;;  %s1513_s11 = smov [#allocation8]  }
   0x6   :  { %39 = dma.hbm_to_vmem [thread:$0]  %s32_s26, 1024, %s34_s28, [#allocation6], %s1511_s9, %s1511_s9, %s1512_s10  }
   0x7   :  { %s57_s12 = sshll.u32 %s1513_s11, 4  ;;  %s1514_s13 = smov 128   ;;  %s58_s12 = int_to_ptr.vmem [resolvable:$true] %s57_s12 }
   0x8   :  { %s1515_s14 = smov 8   ;;  %s21_s16 = sshll.u32 %s1596_s0, 4  ;;  %s22_s16 = int_to_ptr.hbm [resolvable:$true] %s21_s16 }
   0x9   :  { %63 = dma.hbm_to_vmem [thread:$0]  %s56_s8, 8192, %s58_s12, [#allocation9], %s1514_s13, %s1514_s13, %s1515_s14  }
   0xa   :  { %s1516_s17 = smov [#allocation2]   ;;  %s45_s20 = sshll.u32 %s1598_s2, 4  ;;  %s46_s20 = int_to_ptr.hbm [resolvable:$true] %s45_s20 }
   0xb   :  { %s23_s18 = sshll.u32 %s1516_s17, 4  ;;  %s1517_s21 = smov [#allocation7]   ;;  %s24_s18 = int_to_ptr.vmem [resolvable:$true] %s23_s18 }
   0xc   :  { %26 = dma.hbm_to_vmem [thread:$0]  %s22_s16, 64, %s24_s18, [#allocation3]  }
   0xd   :  { %s47_s22 = sshll.u32 %s1517_s21, 4  ;;  %s70_s25 = sshll.u32 %s1601_s5, 4  ;;  %s48_s22 = int_to_ptr.vmem [resolvable:$true] %s47_s22  ;;  %s71_s25 = int_to_ptr.hbm [resolvable:$true] %s70_s25 }
   0xe   :  { %50 = dma.hbm_to_vmem [thread:$0]  %s46_s20, 64, %s48_s22, [#allocation6]  }
   0xf   :  { %s1518_s0 = smov [#allocation10]   ;;  %s1519_s27 = smov 64  }
  0x10   :  { %s72_s26 = sshll.u32 %s1518_s0, 4  ;;  %s1520_s28 = smov 4   ;;  %s73_s26 = int_to_ptr.vmem [resolvable:$true] %s72_s26 }
  0x11   :  { %78 = dma.hbm_to_vmem [thread:$0]  %s71_s25, 2048, %s73_s26, [#allocation9], %s1519_s27, %s1519_s27, %s1520_s28  }
  0x12   :  { %1502 = dma.done.wait [#allocation3], 64  }
  0x13   :  { %1503 = vsyncadd [#allocation3], 4294967232 }
  0x14   :  { %1504 = dma.done.wait [#allocation6], 1088  }
  0x15   :  { %1505 = vsyncadd [#allocation6], 4294966208 }
  0x16   :  { %1506 = dma.done.wait [#allocation9], 10240  }
  0x17   :  { %1507 = vsyncadd [#allocation9], 4294957056  ;;  %v919_v0 = vld [vmem:[#allocation5 + $0x20] sm:$0xf]  ;;  %v1263_v1 = vld [vmem:[#allocation5 + $0x2c] sm:$0xf0] }
  0x18   :  { %v1261_v2 = vld [vmem:[#allocation5 + $0x24] sm:$0xf]  ;;  %v920_v3 = vor.u32 %v1263_v1, %v919_v0  ;;  %v921_v4 = vld [vmem:[#allocation5 + $0x30] sm:$0xf0]  ;;  %v903_v5 = vld [vmem:[#allocation5] sm:$0xf] }
  0x19   :  { %v1259_v6 = vld [vmem:[#allocation5 + $0xc] sm:$0xf0]  ;;  %v924_v7 = vor.u32 %v1261_v2, %v921_v4  ;;  %v1257_v8 = vld [vmem:[#allocation5 + $0x4] sm:$0xf]  ;;  %v905_v9 = vld [vmem:[#allocation5 + $0x10] sm:$0xf0] }
  0x1a   :  { %vm161_vm0 = vcmask 261120   ;;  %171 = vmatpush.bf16.msra.mxu2 %v920_v3  ;;  %v904_v10 = vor.u32 %v1259_v6, %v903_v5  ;;  %v927_v11 = vld [vmem:[#allocation5 + $0x28] sm:$0xf]  ;;  %v1264_v12 = vld [vmem:[#allocation5 + $0x34] sm:$0xf0]  ;;  %v908_v14 = vor.u32 %v1257_v8, %v905_v9  ;;  %s1521_s30 = smov [#allocation11]  }
  0x1b   :  { %v1262_v13 = vld [vmem:[#allocation5 + $0x2c] sm:$0xf]  ;;  %184 = vmatpush.bf16.msra.mxu3 %v924_v7  ;;  %v928_v15 = vor.u32 %v1264_v12, %v927_v11  ;;  %v929_v16 = vld [vmem:[#allocation5 + $0x38] sm:$0xf0]  ;;  %v911_v17 = vld [vmem:[#allocation5 + $0x8] sm:$0xf] }
  0x1c   :  { %v1260_v18 = vld [vmem:[#allocation5 + $0x14] sm:$0xf0]  ;;  %v1577_v19 = vld [vmem:[#allocation2] sm:$0xf]  ;;  %v932_v20 = vor.u32 %v1262_v13, %v929_v16  ;;  %v1258_v21 = vld [vmem:[#allocation5 + $0xc] sm:$0xf] }
  0x1d   :  { %v913_v22 = vld [vmem:[#allocation5 + $0x18] sm:$0xf0]  ;;  %v995_v23 = vld [vmem:[#allocation8 + $0x70] sm:$0xf]  ;;  %v987_v29 = vld [vmem:[#allocation8 + $0x60] sm:$0xf]  ;;  %v912_v32 = vor.u32 %v1260_v18, %v911_v17 }
  0x1e   :  { %v1280_v24 = vld [vmem:[#allocation8 + $0x74] sm:$0xf0]  ;;  %v1059_v25 = vld [vmem:[#allocation8 + $0xf0] sm:$0xf]  ;;  %172 = vmatpush.bf16.msra.mxu2 %v904_v10  ;;  %v1278_v30 = vld [vmem:[#allocation8 + $0x64] sm:$0xf0]  ;;  %v916_v34 = vor.u32 %v1258_v21, %v913_v22 }
  0x1f   :  { %v1296_v26 = vld [vmem:[#allocation8 + $0xf4] sm:$0xf0]  ;;  %v996_v27 = vor.u32 %v1280_v24, %v995_v23  ;;  %v1051_v31 = vld [vmem:[#allocation8 + $0xe0] sm:$0xf]  ;;  %185 = vmatpush.bf16.msra.mxu3 %v908_v14  ;;  %v1294_v33 = vld [vmem:[#allocation8 + $0xe4] sm:$0xf0]  ;;  %v988_v35 = vor.u32 %v1278_v30, %v987_v29 }
  0x20   :  { %v1060_v28 = vor.u32 %v1296_v26, %v1059_v25  ;;  %v1052_v36 = vor.u32 %v1294_v33, %v1051_v31  ;;  %v979_v37 = vld [vmem:[#allocation8 + $0x50] sm:$0xf]  ;;  %v1276_v38 = vld [vmem:[#allocation8 + $0x54] sm:$0xf0]  ;;  %v971_v44 = vld [vmem:[#allocation8 + $0x40] sm:$0xf] }
  0x21   :  { %615 = vmatpush.bf16.msra.mxu0 %v996_v27  ;;  %933 = vmatmul.msk.bf16.vlgmr.msra.gmra.mxu2 %vm161_vm0, %v1577_v19  ;;  %v1043_v39 = vld [vmem:[#allocation8 + $0xd0] sm:$0xf]  ;;  %v1292_v40 = vld [vmem:[#allocation8 + $0xd4] sm:$0xf0]  ;;  %v980_v43 = vor.u32 %v1276_v38, %v979_v37  ;;  %v1274_v49 = vld [vmem:[#allocation8 + $0x44] sm:$0xf0] }
  0x22   :  { %197 = vmatpush.bf16.msrb.mxu2 %v928_v15  ;;  %628 = vmatpush.bf16.msra.mxu1 %v1060_v28  ;;  %v1123_v41 = vld [vmem:[#allocation8 + $0x170] sm:$0xf]  ;;  %v1312_v42 = vld [vmem:[#allocation8 + $0x174] sm:$0xf0]  ;;  %v1044_v48 = vor.u32 %v1292_v40, %v1043_v39  ;;  %v1035_v50 = vld [vmem:[#allocation8 + $0xc0] sm:$0xf]  ;;  %v972_v58 = vor.u32 %v1274_v49, %v971_v44 }
  0x23   :  { %210 = vmatpush.bf16.msrb.mxu3 %v932_v20  ;;  %v1124_v45 = vor.u32 %v1312_v42, %v1123_v41  ;;  %v1187_v46 = vld [vmem:[#allocation8 + $0x1f0] sm:$0xf]  ;;  %v1328_v47 = vld [vmem:[#allocation8 + $0x1f4] sm:$0xf0]  ;;  %v1290_v51 = vld [vmem:[#allocation8 + $0xc4] sm:$0xf0] }
  0x24   :  { %934 = vmatmul.msk.bf16.vlgmr.msra.gmra.mxu3 %vm161_vm0, %v1577_v19  ;;  %v1188_v52 = vor.u32 %v1328_v47, %v1187_v46  ;;  %v1115_v53 = vld [vmem:[#allocation8 + $0x160] sm:$0xf]  ;;  %v1310_v54 = vld [vmem:[#allocation8 + $0x164] sm:$0xf0]  ;;  %v963_v59 = vld [vmem:[#allocation8 + $0x30] sm:$0xf]  ;;  %v1036_v63 = vor.u32 %v1290_v51, %v1035_v50 }
  0x25   :  { %616 = vmatpush.bf16.msra.mxu0 %v988_v35  ;;  %v1179_v55 = vld [vmem:[#allocation8 + $0x1e0] sm:$0xf]  ;;  %v1116_v56 = vor.u32 %v1310_v54, %v1115_v53  ;;  %v1326_v57 = vld [vmem:[#allocation8 + $0x1e4] sm:$0xf0]  ;;  %v1272_v60 = vld [vmem:[#allocation8 + $0x34] sm:$0xf0] }
  0x26   :  { %198 = vmatpush.bf16.msrb.mxu2 %v912_v32  ;;  %629 = vmatpush.bf16.msra.mxu1 %v1052_v36  ;;  %v1180_v61 = vor.u32 %v1326_v57, %v1179_v55  ;;  %v1107_v62 = vld [vmem:[#allocation8 + $0x150] sm:$0xf]  ;;  %v1308_v0 = vld [vmem:[#allocation8 + $0x154] sm:$0xf0]  ;;  %v1099_v7 = vld [vmem:[#allocation8 + $0x140] sm:$0xf]  ;;  %v964_v9 = vor.u32 %v1272_v60, %v963_v59 }
  0x27   :  { %211 = vmatpush.bf16.msrb.mxu3 %v916_v34  ;;  %v1171_v1 = vld [vmem:[#allocation8 + $0x1d0] sm:$0xf]  ;;  %v1324_v2 = vld [vmem:[#allocation8 + $0x1d4] sm:$0xf0]  ;;  %v1108_v5 = vor.u32 %v1308_v0, %v1107_v62  ;;  %v1306_v8 = vld [vmem:[#allocation8 + $0x144] sm:$0xf0] }
  0x28   :  { %v1027_v3 = vld [vmem:[#allocation8 + $0xb0] sm:$0xf]  ;;  %v1288_v4 = vld [vmem:[#allocation8 + $0xb4] sm:$0xf0]  ;;  %v1172_v6 = vor.u32 %v1324_v2, %v1171_v1  ;;  %v1163_v10 = vld [vmem:[#allocation8 + $0x1c0] sm:$0xf]  ;;  %v1100_v17 = vor.u32 %v1306_v8, %v1099_v7 }
  0x29   :  { %617 = vmatpush.bf16.msra.mxu0 %v980_v43  ;;  %v1322_v11 = vld [vmem:[#allocation8 + $0x1c4] sm:$0xf0]  ;;  %v1028_v12 = vor.u32 %v1288_v4, %v1027_v3  ;;  %v955_v13 = vld [vmem:[#allocation8 + $0x20] sm:$0xf]  ;;  %v1091_v20 = vld [vmem:[#allocation8 + $0x130] sm:$0xf] }
  0x2a   :  { %641 = vmatpush.bf16.msra.mxu2 %v1124_v45  ;;  %630 = vmatpush.bf16.msra.mxu1 %v1044_v48  ;;  %v1270_v14 = vld [vmem:[#allocation8 + $0x24] sm:$0xf0]  ;;  %v1019_v15 = vld [vmem:[#allocation8 + $0xa0] sm:$0xf]  ;;  %v1164_v18 = vor.u32 %v1322_v11, %v1163_v10  ;;  %v1304_v21 = vld [vmem:[#allocation8 + $0x134] sm:$0xf0] }
  0x2b   :  { %654 = vmatpush.bf16.msra.mxu3 %v1188_v52  ;;  %v1286_v16 = vld [vmem:[#allocation8 + $0xa4] sm:$0xf0]  ;;  %v956_v22 = vor.u32 %v1270_v14, %v955_v13  ;;  %v1155_v23 = vld [vmem:[#allocation8 + $0x1b0] sm:$0xf]  ;;  %v1320_v24 = vld [vmem:[#allocation8 + $0x1b4] sm:$0xf0]  ;;  %v1092_v30 = vor.u32 %v1304_v21, %v1091_v20 }
  0x2c   :  { %v1020_v25 = vor.u32 %v1286_v16, %v1019_v15  ;;  %v947_v26 = vld [vmem:[#allocation8 + $0x10] sm:$0xf]  ;;  %v1268_v27 = vld [vmem:[#allocation8 + $0x14] sm:$0xf0]  ;;  %v1156_v31 = vor.u32 %v1320_v24, %v1155_v23  ;;  %v1083_v32 = vld [vmem:[#allocation8 + $0x120] sm:$0xf] }
  0x2d   :  { %618 = vmatpush.bf16.msra.mxu0 %v972_v58  ;;  %v1011_v28 = vld [vmem:[#allocation8 + $0x90] sm:$0xf]  ;;  %v1284_v29 = vld [vmem:[#allocation8 + $0x94] sm:$0xf0]  ;;  %v1302_v33 = vld [vmem:[#allocation8 + $0x124] sm:$0xf0]  ;;  %v948_v34 = vor.u32 %v1268_v27, %v947_v26 }
  0x2e   :  { %642 = vmatpush.bf16.msra.mxu2 %v1116_v56  ;;  %631 = vmatpush.bf16.msra.mxu1 %v1036_v63  ;;  %v1147_v35 = vld [vmem:[#allocation8 + $0x1a0] sm:$0xf]  ;;  %v1318_v36 = vld [vmem:[#allocation8 + $0x1a4] sm:$0xf0]  ;;  %v1012_v37 = vor.u32 %v1284_v29, %v1011_v28  ;;  %v1279_v42 = vld [vmem:[#allocation8 + $0x74] sm:$0xf]  ;;  %v1084_v43 = vor.u32 %v1302_v33, %v1083_v32 }
  0x2f   :  { %655 = vmatpush.bf16.msra.mxu3 %v1180_v61  ;;  %v939_v38 = vld [vmem:[#allocation8] sm:$0xf]  ;;  %v1266_v39 = vld [vmem:[#allocation8 + $0x4] sm:$0xf0]  ;;  %v1295_v44 = vld [vmem:[#allocation8 + $0xf4] sm:$0xf]  ;;  %v1148_v46 = vor.u32 %v1318_v36, %v1147_v35 }
  0x30   :  { %v1003_v40 = vld [vmem:[#allocation8 + $0x80] sm:$0xf]  ;;  %v1282_v41 = vld [vmem:[#allocation8 + $0x84] sm:$0xf0]  ;;  %v1061_v45 = vld [vmem:[#allocation8 + $0xf8] sm:$0xf0]  ;;  %v940_v47 = vor.u32 %v1266_v39, %v939_v38 }
  0x31   :  { %619 = vmatpush.bf16.msra.mxu0 %v964_v9  ;;  %935 = vmatmul.msk.bf16.vlgmr.msrb.gmra.mxu2 %vm161_vm0, %v1577_v19  ;;  %v1004_v48 = vor.u32 %v1282_v41, %v1003_v40  ;;  %v1064_v50 = vor.u32 %v1295_v44, %v1061_v45  ;;  %v1277_v51 = vld [vmem:[#allocation8 + $0x64] sm:$0xf]  ;;  %v989_v52 = vld [vmem:[#allocation8 + $0x68] sm:$0xf0]  ;;  %v1275_v57 = vld [vmem:[#allocation8 + $0x54] sm:$0xf] }
  0x32   :  { %643 = vmatpush.bf16.msra.mxu2 %v1108_v5  ;;  %632 = vmatpush.bf16.msra.mxu1 %v1028_v12  ;;  %v1293_v53 = vld [vmem:[#allocation8 + $0xe4] sm:$0xf]  ;;  %v1053_v54 = vld [vmem:[#allocation8 + $0xe8] sm:$0xf0]  ;;  %v992_v55 = vor.u32 %v1277_v51, %v989_v52  ;;  %v981_v58 = vld [vmem:[#allocation8 + $0x58] sm:$0xf0] }
  0x33   :  { %656 = vmatpush.bf16.msra.mxu3 %v1172_v6  ;;  %v1056_v56 = vor.u32 %v1293_v53, %v1053_v54  ;;  %v1291_v59 = vld [vmem:[#allocation8 + $0xd4] sm:$0xf]  ;;  %v984_v60 = vor.u32 %v1275_v57, %v981_v58  ;;  %v1045_v61 = vld [vmem:[#allocation8 + $0xd8] sm:$0xf0]  ;;  %v1075_v63 = vld [vmem:[#allocation8 + $0x110] sm:$0xf] }
  0x34   :  { %936 = vmatmul.msk.bf16.vlgmr.msrb.gmra.mxu3 %vm161_vm0, %v1577_v19  ;;  %v997_v19 = vld [vmem:[#allocation8 + $0x78] sm:$0xf0]  ;;  %v1048_v62 = vor.u32 %v1291_v59, %v1045_v61  ;;  %v1300_v0 = vld [vmem:[#allocation8 + $0x114] sm:$0xf0]  ;;  %v1139_v1 = vld [vmem:[#allocation8 + $0x190] sm:$0xf] }
  0x35   :  { %620 = vmatpush.bf16.msra.mxu0 %v956_v22  ;;  %v1000_v49 = vor.u32 %v1279_v42, %v997_v19  ;;  %v1076_v2 = vor.u32 %v1300_v0, %v1075_v63  ;;  %v1316_v3 = vld [vmem:[#allocation8 + $0x194] sm:$0xf0]  ;;  %v1273_v4 = vld [vmem:[#allocation8 + $0x44] sm:$0xf]  ;;  %v973_v5 = vld [vmem:[#allocation8 + $0x48] sm:$0xf0] }
  0x36   :  { %644 = vmatpush.bf16.msra.mxu2 %v1100_v17  ;;  %633 = vmatpush.bf16.msra.mxu1 %v1020_v25  ;;  %v1140_v6 = vor.u32 %v1316_v3, %v1139_v1  ;;  %v976_v7 = vor.u32 %v1273_v4, %v973_v5  ;;  %v1289_v8 = vld [vmem:[#allocation8 + $0xc4] sm:$0xf]  ;;  %v1037_v9 = vld [vmem:[#allocation8 + $0xc8] sm:$0xf0]  ;;  %v1067_v11 = vld [vmem:[#allocation8 + $0x100] sm:$0xf] }
  0x37   :  { %657 = vmatpush.bf16.msra.mxu3 %v1164_v18  ;;  %v1040_v10 = vor.u32 %v1289_v8, %v1037_v9  ;;  %v1298_v12 = vld [vmem:[#allocation8 + $0x104] sm:$0xf0]  ;;  %v1131_v13 = vld [vmem:[#allocation8 + $0x180] sm:$0xf]  ;;  %v1271_v16 = vld [vmem:[#allocation8 + $0x34] sm:$0xf] }
  0x38   :  { %v1068_v14 = vor.u32 %v1298_v12, %v1067_v11  ;;  %v1314_v15 = vld [vmem:[#allocation8 + $0x184] sm:$0xf0]  ;;  %v965_v17 = vld [vmem:[#allocation8 + $0x38] sm:$0xf0]  ;;  %v1287_v21 = vld [vmem:[#allocation8 + $0xb4] sm:$0xf] }
  0x39   :  { %621 = vmatpush.bf16.msra.mxu0 %v948_v34  ;;  %v1132_v18 = vor.u32 %v1314_v15, %v1131_v13  ;;  %v968_v20 = vor.u32 %v1271_v16, %v965_v17  ;;  %v1029_v22 = vld [vmem:[#allocation8 + $0xb8] sm:$0xf0]  ;;  %v1311_v23 = vld [vmem:[#allocation8 + $0x174] sm:$0xf]  ;;  %v1285_v32 = vld [vmem:[#allocation8 + $0xa4] sm:$0xf] }
  0x3a   :  { %645 = vmatpush.bf16.msra.mxu2 %v1092_v30  ;;  %634 = vmatpush.bf16.msra.mxu1 %v1012_v37  ;;  %v1032_v24 = vor.u32 %v1287_v21, %v1029_v22  ;;  %v1125_v25 = vld [vmem:[#allocation8 + $0x178] sm:$0xf0]  ;;  %v1327_v26 = vld [vmem:[#allocation8 + $0x1f4] sm:$0xf]  ;;  %v1269_v30 = vld [vmem:[#allocation8 + $0x24] sm:$0xf] }
  0x3b   :  { %658 = vmatpush.bf16.msra.mxu3 %v1156_v31  ;;  %v1189_v27 = vld [vmem:[#allocation8 + $0x1f8] sm:$0xf0]  ;;  %v1128_v28 = vor.u32 %v1311_v23, %v1125_v25  ;;  %v957_v31 = vld [vmem:[#allocation8 + $0x28] sm:$0xf0]  ;;  %v1309_v35 = vld [vmem:[#allocation8 + $0x164] sm:$0xf] }
  0x3c   :  { %v1192_v29 = vor.u32 %v1327_v26, %v1189_v27  ;;  %v960_v33 = vor.u32 %v1269_v30, %v957_v31  ;;  %v1021_v34 = vld [vmem:[#allocation8 + $0xa8] sm:$0xf0]  ;;  %v1325_v39 = vld [vmem:[#allocation8 + $0x1e4] sm:$0xf]  ;;  %v1267_v42 = vld [vmem:[#allocation8 + $0x14] sm:$0xf] }
  0x3d   :  { %622 = vmatpush.bf16.msra.mxu0 %v940_v47  ;;  %v1117_v36 = vld [vmem:[#allocation8 + $0x168] sm:$0xf0]  ;;  %v1024_v37 = vor.u32 %v1285_v32, %v1021_v34  ;;  %v949_v19 = vld [vmem:[#allocation8 + $0x18] sm:$0xf0]  ;;  %v1265_v53 = vld [vmem:[#allocation8 + $0x4] sm:$0xf] }
  0x3e   :  { %646 = vmatpush.bf16.msra.mxu2 %v1084_v43  ;;  %635 = vmatpush.bf16.msra.mxu1 %v1004_v48  ;;  %v1120_v38 = vor.u32 %v1309_v35, %v1117_v36  ;;  %v1181_v40 = vld [vmem:[#allocation8 + $0x1e8] sm:$0xf0]  ;;  %v1283_v43 = vld [vmem:[#allocation8 + $0x94] sm:$0xf]  ;;  %v952_v44 = vor.u32 %v1267_v42, %v949_v19  ;;  %v1013_v45 = vld [vmem:[#allocation8 + $0x98] sm:$0xf0] }
  0x3f   :  { %659 = vmatpush.bf16.msra.mxu3 %v1148_v46  ;;  %v1184_v41 = vor.u32 %v1325_v39, %v1181_v40  ;;  %v1307_v46 = vld [vmem:[#allocation8 + $0x154] sm:$0xf]  ;;  %v1109_v47 = vld [vmem:[#allocation8 + $0x158] sm:$0xf0]  ;;  %v1016_v48 = vor.u32 %v1283_v43, %v1013_v45  ;;  %v941_v54 = vld [vmem:[#allocation8 + $0x8] sm:$0xf0] }
  0x40   :  { %v1173_v51 = vld [vmem:[#allocation8 + $0x1d8] sm:$0xf0]  ;;  %v1005_v57 = vld [vmem:[#allocation8 + $0x88] sm:$0xf0]  ;;  %v1305_v58 = vld [vmem:[#allocation8 + $0x144] sm:$0xf] }
  0x41   :  { %667 = vmatpush.bf16.msrb.mxu0 %v1000_v49  ;;  %v1112_v49 = vor.u32 %v1307_v46, %v1109_v47  ;;  %v1101_v59 = vld [vmem:[#allocation8 + $0x148] sm:$0xf0]  ;;  %v1303_v1 = vld [vmem:[#allocation8 + $0x134] sm:$0xf]  ;;  %v1157_v5 = vld [vmem:[#allocation8 + $0x1b8] sm:$0xf0] }
  0x42   :  { %680 = vmatpush.bf16.msrb.mxu1 %v1064_v50  ;;  %647 = vmatpush.bf16.msra.mxu2 %v1076_v2  ;;  %v1323_v50 = vld [vmem:[#allocation8 + $0x1d4] sm:$0xf]  ;;  %v1104_v61 = vor.u32 %v1305_v58, %v1101_v59  ;;  %v1165_v63 = vld [vmem:[#allocation8 + $0x1c8] sm:$0xf0]  ;;  %v1093_v2 = vld [vmem:[#allocation8 + $0x138] sm:$0xf0] }
  0x43   :  { %660 = vmatpush.bf16.msra.mxu3 %v1140_v6  ;;  %v1176_v52 = vor.u32 %v1323_v50, %v1173_v51  ;;  %v1319_v3 = vld [vmem:[#allocation8 + $0x1b4] sm:$0xf]  ;;  %v1096_v4 = vor.u32 %v1303_v1, %v1093_v2  ;;  %v1085_v8 = vld [vmem:[#allocation8 + $0x128] sm:$0xf0]  ;;  %v1317_v9 = vld [vmem:[#allocation8 + $0x1a4] sm:$0xf] }
  0x44   :  { %v1160_v6 = vor.u32 %v1319_v3, %v1157_v5  ;;  %v1149_v11 = vld [vmem:[#allocation8 + $0x1a8] sm:$0xf0]  ;;  %v1077_v15 = vld [vmem:[#allocation8 + $0x118] sm:$0xf0]  ;;  %v1315_v16 = vld [vmem:[#allocation8 + $0x194] sm:$0xf] }
  0x45   :  { %668 = vmatpush.bf16.msrb.mxu0 %v992_v55  ;;  %v1281_v55 = vld [vmem:[#allocation8 + $0x84] sm:$0xf]  ;;  %v1152_v13 = vor.u32 %v1317_v9, %v1149_v11  ;;  %v1141_v17 = vld [vmem:[#allocation8 + $0x198] sm:$0xf0]  ;;  %v1069_v25 = vld [vmem:[#allocation8 + $0x108] sm:$0xf0] }
  0x46   :  { %681 = vmatpush.bf16.msrb.mxu1 %v1056_v56  ;;  %648 = vmatpush.bf16.msra.mxu2 %v1068_v14  ;;  %v944_v56 = vor.u32 %v1265_v53, %v941_v54  ;;  %v1299_v14 = vld [vmem:[#allocation8 + $0x114] sm:$0xf]  ;;  %v1144_v22 = vor.u32 %v1315_v16, %v1141_v17  ;;  %v1336_v50 = vld [vmem:[#allocation10 + $0x38] sm:$0xff]  ;;  %v1333_v53 = vld [vmem:[#allocation10 + $0x20] sm:$0xff]  ;;  %s887_s8 = sshll.u32 %s1521_s30, 4  ;;  %s889_s11 = sshll.u32 %s1603_s7, 4  ;;  %s888_s8 = int_to_ptr.vmem [resolvable:$true] %s887_s8  ;;  %s890_s11 = int_to_ptr.hbm [resolvable:$true] %s889_s11 }
  0x47   :  { %661 = vmatpush.bf16.msra.mxu3 %v1132_v18  ;;  %v1080_v21 = vor.u32 %v1299_v14, %v1077_v15  ;;  %v1335_v51 = vld [vmem:[#allocation10 + $0x30] sm:$0xff]  ;;  %v1332_v54 = vld [vmem:[#allocation10 + $0x18] sm:$0xff]  ;;  %v1330_v58 = vld [vmem:[#allocation10 + $0x8] sm:$0xff] }
  0x48   :  { %v1342_v59 = vld [vmem:[#allocation10 + $0x68] sm:$0xff]  ;;  %v1339_v1 = vld [vmem:[#allocation10 + $0x50] sm:$0xff]  ;;  %v289_v5 = vld [vmem:[%s1600_s4] sm:$0x3] }
  0x49   :  { %669 = vmatpush.bf16.msrb.mxu0 %v984_v60  ;;  %v1008_v60 = vor.u32 %v1281_v55, %v1005_v57  ;;  %v1344_v55 = vld [vmem:[#allocation10 + $0x78] sm:$0xff]  ;;  %v1343_v57 = vld [vmem:[#allocation10 + $0x70] sm:$0xff]  ;;  %v1338_v2 = vld [vmem:[#allocation10 + $0x48] sm:$0xff] }
  0x4a   :  { %682 = vmatpush.bf16.msrb.mxu1 %v1048_v62  ;;  %693 = vmatpush.bf16.msrb.mxu2 %v1128_v28  ;;  %v1321_v62 = vld [vmem:[#allocation8 + $0x1c4] sm:$0xf] }
  0x4b   :  { %706 = vmatpush.bf16.msrb.mxu3 %v1192_v29  ;;  %v1168_v0 = vor.u32 %v1321_v62, %v1165_v63  ;;  %v1313_v28 = vld [vmem:[#allocation8 + $0x184] sm:$0xf]  ;;  %v1133_v29 = vld [vmem:[#allocation8 + $0x188] sm:$0xf0]  ;;  %v1340_v62 = vld [vmem:[#allocation10 + $0x58] sm:$0xff] }
  0x4c   :  { %v1136_v34 = vor.u32 %v1313_v28, %v1133_v29 }
  0x4d   :  { %670 = vmatpush.bf16.msrb.mxu0 %v976_v7  ;;  %v1301_v7 = vld [vmem:[#allocation8 + $0x124] sm:$0xf] }
  0x4e   :  { %683 = vmatpush.bf16.msrb.mxu1 %v1040_v10  ;;  %694 = vmatpush.bf16.msrb.mxu2 %v1120_v38  ;;  %v111_v10 = vld [vmem:[#allocation7] sm:$0xf]  ;;  %v1088_v12 = vor.u32 %v1301_v7, %v1085_v8  ;;  %v291_v7 = vperm.slane %v289_v5, 0 }
  0x4f   :  { %707 = vmatpush.bf16.msrb.mxu3 %v1184_v41  ;;  %v113_v18 = vperm.slane %v111_v10, 0  ;;  %v115_v39 = vperm.slane %v111_v10, 2  ;;  %v116_v40 = vperm.slane %v111_v10, 3 }
  0x51   :  { %671 = vmatpush.bf16.msrb.mxu0 %v968_v20  ;;  %v114_v20 = vperm.slane %v111_v10, 1 }
  0x52   :  { %684 = vmatpush.bf16.msrb.mxu1 %v1032_v24  ;;  %695 = vmatpush.bf16.msrb.mxu2 %v1112_v49  ;;  %v1297_v24 = vld [vmem:[#allocation8 + $0x104] sm:$0xf] }
  0x53   :  { %708 = vmatpush.bf16.msrb.mxu3 %v1176_v52  ;;  %v1072_v32 = vor.u32 %v1297_v24, %v1069_v25  ;;  %v1334_v52 = vld [vmem:[#allocation10 + $0x28] sm:$0xff] }
  0x55   :  { %672 = vmatpush.bf16.msrb.mxu0 %v960_v33 }
  0x56   :  { %685 = vmatpush.bf16.msrb.mxu1 %v1024_v37  ;;  %696 = vmatpush.bf16.msrb.mxu2 %v1104_v61  ;;  %v1341_v61 = vld [vmem:[#allocation10 + $0x60] sm:$0xff] }
  0x57   :  { %709 = vmatpush.bf16.msrb.mxu3 %v1168_v0 }
  0x59   :  { %673 = vmatpush.bf16.msrb.mxu0 %v952_v44 }
  0x5a   :  { %686 = vmatpush.bf16.msrb.mxu1 %v1016_v48  ;;  %697 = vmatpush.bf16.msrb.mxu2 %v1096_v4 }
  0x5b   :  { %710 = vmatpush.bf16.msrb.mxu3 %v1160_v6  ;;  %v1337_v6 = vld [vmem:[#allocation10 + $0x40] sm:$0xff] }
  0x5d   :  { %674 = vmatpush.bf16.msrb.mxu0 %v944_v56  ;;  %v1331_v56 = vld [vmem:[#allocation10 + $0x10] sm:$0xff] }
  0x5e   :  { %687 = vmatpush.bf16.msrb.mxu1 %v1008_v60  ;;  %698 = vmatpush.bf16.msrb.mxu2 %v1088_v12  ;;  %v1329_v60 = vld [vmem:[#allocation10] sm:$0xff] }
  0x5f   :  { %711 = vmatpush.bf16.msrb.mxu3 %v1152_v13 }
  0x62   :  { %699 = vmatpush.bf16.msrb.mxu2 %v1080_v21 }
  0x63   :  { %712 = vmatpush.bf16.msrb.mxu3 %v1144_v22 }
  0x66   :  { %700 = vmatpush.bf16.msrb.mxu2 %v1072_v32 }
  0x67   :  { %713 = vmatpush.bf16.msrb.mxu3 %v1136_v34 }
  0xa4   :  { %v174_v23 = vpop.f32.mrf.mxu2 }
  0xa5   :  { %v175_v26 = vadd.f32 %v174_v23, %v113_v18 }
  0xa7   :  { %v187_v27 = vpop.f32.mrf.mxu3  ;;  %v217_v31 = vmax.f32 %v175_v26, 0.0 }
  0xa8   :  { %v188_v30 = vadd.f32 %v187_v27, %v114_v20  ;;  %v292_v20 = vperm.slane %v289_v5, 1 }
  0xa9   :  { %v221_v35 = vpack.c.bf16 %v217_v31, %v217_v31 }
  0xaa   :  { %v218_v33 = vmax.f32 %v188_v30, 0.0 }
  0xab   :  { %623 = vmatmul.bf16.vlgmr.msra.gmra.mxu0 %v221_v35 }
  0xac   :  { %v222_v36 = vpack.c.bf16 %v218_v33, %v218_v33  ;;  %v176_v37 = vpop.f32.mrf.mxu2  ;;  %855 = vmatpush.bf16.msra.mxu0 %v1336_v50 }
  0xae   :  { %636 = vmatmul.bf16.vlgmr.msra.gmra.mxu1 %v222_v36 }
  0xaf   :  { %v189_v38 = vpop.f32.mrf.mxu3  ;;  %868 = vmatpush.bf16.msra.mxu1 %v1344_v55 }
  0xb0   :  { %856 = vmatpush.bf16.msra.mxu0 %v1335_v51 }
  0xb3   :  { %869 = vmatpush.bf16.msra.mxu1 %v1343_v57 }
  0xb4   :  { %v200_v41 = vpop.f32.mrf.mxu2  ;;  %857 = vmatpush.bf16.msra.mxu0 %v1334_v52 }
  0xb5   :  { %v201_v42 = vadd.f32 %v200_v41, %v115_v39 }
  0xb7   :  { %v213_v19 = vpop.f32.mrf.mxu3  ;;  %v219_v44 = vmax.f32 %v201_v42, 0.0  ;;  %870 = vmatpush.bf16.msra.mxu1 %v1342_v59 }
  0xb8   :  { %v214_v43 = vadd.f32 %v213_v19, %v116_v40  ;;  %858 = vmatpush.bf16.msra.mxu0 %v1333_v53 }
  0xb9   :  { %v223_v46 = vpack.c.bf16 %v219_v44, %v219_v44 }
  0xba   :  { %v220_v45 = vmax.f32 %v214_v43, 0.0 }
  0xbb   :  { %649 = vmatmul.bf16.vlgmr.msra.gmra.mxu2 %v223_v46  ;;  %675 = vmatmul.bf16.vlgmr.msrb.gmra.mxu0 %v221_v35 }
  0xbc   :  { %v224_v47 = vpack.c.bf16 %v220_v45, %v220_v45  ;;  %v202_v48 = vpop.f32.mrf.mxu2  ;;  %859 = vmatpush.bf16.msra.mxu0 %v1332_v54  ;;  %871 = vmatpush.bf16.msra.mxu1 %v1341_v61 }
  0xbe   :  { %662 = vmatmul.bf16.vlgmr.msra.gmra.mxu3 %v224_v47  ;;  %688 = vmatmul.bf16.vlgmr.msrb.gmra.mxu1 %v222_v36  ;;  %v1357_v36 = vld [vmem:[%s1602_s6] ss:$0 sm:$0xff] }
  0xbf   :  { %v215_v49 = vpop.f32.mrf.mxu3 }
  0xc0   :  { %860 = vmatpush.bf16.msra.mxu0 %v1331_v56  ;;  %872 = vmatpush.bf16.msra.mxu1 %v1340_v62 }
  0xc4   :  { %861 = vmatpush.bf16.msra.mxu0 %v1330_v58  ;;  %873 = vmatpush.bf16.msra.mxu1 %v1339_v1 }
  0xc8   :  { %862 = vmatpush.bf16.msra.mxu0 %v1329_v60  ;;  %874 = vmatpush.bf16.msra.mxu1 %v1338_v2 }
  0xcb   :  { %701 = vmatmul.bf16.vlgmr.msrb.gmra.mxu2 %v223_v46 }
  0xcc   :  { %875 = vmatpush.bf16.msra.mxu1 %v1337_v6 }
  0xce   :  { %714 = vmatmul.bf16.vlgmr.msrb.gmra.mxu3 %v224_v47 }
 0x128   :  { %v624_v63 = vpop.f32.mrf.mxu0 }
 0x129   :  { %v625_v9 = vadd.f32 %v624_v63, %v291_v7 }
 0x12b   :  { %v637_v0 = vpop.f32.mrf.mxu1 }
 0x12c   :  { %v638_v11 = vadd.f32 %v637_v0, %v625_v9 }
 0x130   :  { %v626_v3 = vpop.f32.mrf.mxu0 }
 0x133   :  { %v639_v4 = vpop.f32.mrf.mxu1 }
 0x138   :  { %v676_v8 = vpop.f32.mrf.mxu0 }
 0x139   :  { %v677_v24 = vadd.f32 %v676_v8, %v292_v20 }
 0x13b   :  { %v689_v10 = vpop.f32.mrf.mxu1 }
 0x13c   :  { %v690_v25 = vadd.f32 %v689_v10, %v677_v24 }
 0x13e   :  { %v650_v12 = vpop.f32.mrf.mxu2 }
 0x13f   :  { %v651_v13 = vadd.f32 %v650_v12, %v638_v11 }
 0x140   :  { %v678_v15 = vpop.f32.mrf.mxu0 }
 0x141   :  { %v663_v14 = vpop.f32.mrf.mxu3 }
 0x142   :  { %v664_v16 = vadd.f32 %v663_v14, %v651_v13 }
 0x143   :  { %v691_v17 = vpop.f32.mrf.mxu1 }
 0x144   :  { %v719_v18 = vmax.f32 %v664_v16, 0.0 }
 0x146   :  { %v721_v21 = vpack.c.bf16 %v719_v18, %v719_v18  ;;  %v652_v22 = vpop.f32.mrf.mxu2 }
 0x148   :  { %863 = vmatmul.bf16.vlgmr.msra.gmra.mxu0 %v721_v21 }
 0x149   :  { %v665_v23 = vpop.f32.mrf.mxu3 }
 0x14e   :  { %v702_v26 = vpop.f32.mrf.mxu2 }
 0x14f   :  { %v703_v27 = vadd.f32 %v702_v26, %v690_v25 }
 0x151   :  { %v715_v28 = vpop.f32.mrf.mxu3 }
 0x152   :  { %v716_v29 = vadd.f32 %v715_v28, %v703_v27 }
 0x154   :  { %v720_v30 = vmax.f32 %v716_v29, 0.0 }
 0x156   :  { %v722_v31 = vpack.c.bf16 %v720_v30, %v720_v30  ;;  %v704_v32 = vpop.f32.mrf.mxu2 }
 0x158   :  { %876 = vmatmul.bf16.vlgmr.msra.gmra.mxu1 %v722_v31 }
 0x159   :  { %v717_v33 = vpop.f32.mrf.mxu3 }
 0x1c5   :  { %v864_v34 = vpop.f32.mrf.mxu0 }
 0x1c6   :  { %v865_v37 = vadd.f32 %v1357_v36, %v864_v34 }
 0x1cd   :  { %v866_v35 = vpop.f32.mrf.mxu0 }
 0x1d5   :  { %v877_v38 = vpop.f32.mrf.mxu1 }
 0x1d6   :  { %v878_v39 = vadd.f32 %v877_v38, %v865_v37 }
 0x1d8   :  { %881 = vst [vmem:[#allocation11] sm:$0xff] %v878_v39 }
 0x1d9   :  { %892 = dma.vmem_to_hbm [thread:$0]  %s888_s8, 128, %s890_s11, [#allocation4]  }
 0x1dd   :  { %v879_v40 = vpop.f32.mrf.mxu1 }
 0x1de   :  { %1508 = dma.done.wait [#allocation4], 128  }
 0x1df   :  { %1509 = vsyncadd [#allocation4], 4294967168 }
 0x1e0   :  { %897 = vsyncpa [#allocation3], 1 }
 0x1e1   :  { %898 = vsyncpa [#allocation6], 1 }
 0x1e2   :  { %899 = vsyncpa [#allocation9], 1 }
 0x1e3   :  { %900 = vsyncpa [#allocation4], 1 }

</bundles_post_ra>
